<compile_context>
chip_gen: v6e
topology: v6e:2x2x1
jax: 0.10.0
libtpu: 0.0.40
codegen_flags: <defaults>
</compile_context>

<pallas_src>
import functools

import jax
import jax.numpy as jnp
from jax.experimental import pallas as pl
from jax.experimental.pallas import tpu as pltpu

EPS = 1e-6
LANE = 128
SUBLANE = 8


def _round_up(n, m):
    return ((n + m - 1) // m) * m


def _pad2d(a, rows, cols):
    pr, pc = rows - a.shape[0], cols - a.shape[1]
    if pr == 0 and pc == 0:
        return a
    return jnp.pad(a, ((0, pr), (0, pc)))


def normal_network_kernel(
    x_ref,
    w1_ref, b1_ref,
    w2_ref, b2_ref,
    w3_ref, b3_ref,
    w4_ref, b4_ref,
    out_ref,
    *, out_dim, matmul_dtype,
):
    """4 MXU matmuls + ReLU + exp on one batch tile, all resident in VMEM."""
    # Layer 1: Linear(in -> hidden) + ReLU  (f32 accumulation on the MXU)
    h = jnp.dot(x_ref[...], w1_ref[...], preferred_element_type=jnp.float32)
    h = jnp.maximum(h + b1_ref[...], 0.0)

    # Layer 2: Linear(hidden -> hidden) + ReLU
    h = jnp.dot(h.astype(matmul_dtype), w2_ref[...], preferred_element_type=jnp.float32)
    h = jnp.maximum(h + b2_ref[...], 0.0)

    # Layer 3: Linear(hidden -> hidden) + ReLU
    h = jnp.dot(h.astype(matmul_dtype), w3_ref[...], preferred_element_type=jnp.float32)
    h = jnp.maximum(h + b3_ref[...], 0.0)

    # Layer 4: Linear(hidden -> out_dim + out_dim)   (DIAGONAL noise)
    p = jnp.dot(h.astype(matmul_dtype), w4_ref[...], preferred_element_type=jnp.float32)
    p = p + b4_ref[...]

    # Fused lane-dense output: mu lanes [0, out_dim), sigma lanes [out_dim, ...).
    if out_dim % LANE == 0:
        # Lane-aligned halves: exp only on the sigma lanes (halves EUP work),
        # two lane-dense unmasked stores.
        out_ref[:, :out_dim] = p[:, :out_dim]
        out_ref[:, out_dim:] = jnp.exp(p[:, out_dim:] + EPS)
    else:
        # Unaligned out_dim: lane-iota select (VPU) + EUP exp; exp argument is
        # masked so mu lanes can never produce inf in the discarded branch.
        lane = jax.lax.broadcasted_iota(jnp.int32, p.shape, dimension=1)
        is_sigma = lane >= out_dim
        sig = jnp.exp(jnp.where(is_sigma, p, 0.0) + EPS)
        out_ref[...] = jnp.where(is_sigma, sig, p)


def normal_network_forward(x, params, out_dim, *, block_batch=None,
                           matmul_dtype=jnp.float32):
    """Returns (mu, sigma) — the parameters of Normal(loc=mu, scale=sigma)."""
    (w1, b1), (w2, b2), (w3, b3), (w4, b4) = params
    B, in_dim = x.shape
    hidden_dim = w1.shape[1]
    assert w4.shape[1] == 2 * out_dim  # DIAGONAL: out_dim mu + out_dim sigma

    in_p = _round_up(in_dim, LANE)
    hid_p = _round_up(hidden_dim, LANE)
    out_p = _round_up(2 * out_dim, LANE)

    if block_batch is None:
        B_r = _round_up(B, SUBLANE)
        if B_r < 512:
            # Small/medium batch: one grid step minimizes pallas_call fixed cost
            # and grid-step overhead (the binding cost at these sizes).
            block_batch = B_r
        else:
            # Large batch: >= 2 grid steps so ("parallel",) shards across both
            # v7x TensorCores; 256-512-row tiles approach the HBM roofline on
            # v5e/v6e while amortizing the ~0.35 us/step overhead.
            block_batch = min(512, _round_up(pl.cdiv(B_r, 2), 256))
    B_p = _round_up(B, block_batch)
    grid = (B_p // block_batch,)

    # Wrapper-side zero padding + dtype cast (layout plumbing only).
    x_p = _pad2d(x, B_p, in_p).astype(matmul_dtype)
    w1_p = _pad2d(w1, in_p, hid_p).astype(matmul_dtype)
    w2_p = _pad2d(w2, hid_p, hid_p).astype(matmul_dtype)
    w3_p = _pad2d(w3, hid_p, hid_p).astype(matmul_dtype)
    w4_p = _pad2d(w4, hid_p, out_p).astype(matmul_dtype)
    b1_p = _pad2d(b1, 1, hid_p)
    b2_p = _pad2d(b2, 1, hid_p)
    b3_p = _pad2d(b3, 1, hid_p)
    b4_p = _pad2d(b4, 1, out_p)

    itemsize_w = jnp.dtype(matmul_dtype).itemsize
    w_elems = in_p * hid_p + 2 * hid_p * hid_p + hid_p * out_p
    b_elems = 3 * hid_p + out_p

    # Physical VMEM per TensorCore (v5e/v6e: 128 MiB, v7x: 64 MiB); leave ~15%
    # headroom for compiler-internal scratch / semaphores.
    try:
        phys_vmem = int(pltpu.get_tpu_info().vmem_capacity_bytes)
    except Exception:
        phys_vmem = 64 << 20  # conservative: v7x per-TC VMEM
    vmem_cap = int(phys_vmem * 0.85)

    flops = 2 * B_p * w_elems
    bytes_accessed = (
        w_elems * itemsize_w              # weights (loaded once)
        + b_elems * 4                     # biases (f32)
        + B_p * in_p * itemsize_w         # x
        + B_p * out_p * 4                 # output (f32)
    )
    cost = pl.CostEstimate(flops=flops, transcendentals=B_p * out_p,
                           bytes_accessed=bytes_accessed)

    kernel = functools.partial(normal_network_kernel,
                               out_dim=out_dim, matmul_dtype=matmul_dtype)

    x_spec = pl.BlockSpec((block_batch, in_p), lambda i: (i, 0))     # batch-tiled
    out_specs = pl.BlockSpec((block_batch, out_p), lambda i: (i, 0))
    out_shape = jax.ShapeDtypeStruct((B_p, out_p), jnp.float32)

    def run(single_buffer_resident):
        if single_buffer_resident:
            # Constant block index + Buffered(1): loaded once, stays resident,
            # no second pipeline buffer -> halves resident weight VMEM.
            def resident(r, c):
                return pl.BlockSpec((r, c), lambda i: (0, 0),
                                    pipeline_mode=pl.Buffered(1))
        else:
            def resident(r, c):
                return pl.BlockSpec((r, c), lambda i: (0, 0))

        res_bufs = 1 if single_buffer_resident else 2
        need = (
            (w_elems * itemsize_w + b_elems * 4) * res_bufs        # resident params
            + 2 * block_batch * (in_p * itemsize_w + out_p * 4)    # double-buffered x/out
            + 2 * block_batch * hid_p * 4                          # activation headroom
        )
        vmem_limit = int(min(max(2 * need + (4 << 20), 16 << 20), vmem_cap))

        in_specs = [
            x_spec,
            resident(in_p, hid_p), resident(1, hid_p),             # w1, b1
            resident(hid_p, hid_p), resident(1, hid_p),            # w2, b2
            resident(hid_p, hid_p), resident(1, hid_p),            # w3, b3
            resident(hid_p, out_p), resident(1, out_p),            # w4, b4
        ]
        out = pl.pallas_call(
            kernel,
            out_shape=out_shape,
            grid=grid,
            in_specs=in_specs,
            out_specs=out_specs,
            compiler_params=pltpu.CompilerParams(
                dimension_semantics=("parallel",),   # batch tiles across TCs on v7x
                vmem_limit_bytes=vmem_limit,
            ),
            cost_estimate=cost,
        )(x_p, w1_p, b1_p, w2_p, b2_p, w3_p, b3_p, w4_p, b4_p)
        return jax.block_until_ready(out)

    try:
        out = run(single_buffer_resident=True)
    except Exception:
        # Fallback: default double-buffered resident blocks (always supported).
        out = run(single_buffer_resident=False)

    mu = out[:B, :out_dim]
    sigma = out[:B, out_dim:2 * out_dim]
    return mu, sigma


def init_params(key, in_dim, hidden_dim, out_dim):
    """Deterministic synthetic parameters (PyTorch-Linear-like uniform init).

    Weights are stored as [in_features, out_features]."""
    dims = [(in_dim, hidden_dim),
            (hidden_dim, hidden_dim),
            (hidden_dim, hidden_dim),
            (hidden_dim, out_dim + out_dim)]  # DIAGONAL noise -> out_dim sigma channels
    params = []
    for (fan_in, fan_out) in dims:
        key, kw, kb = jax.random.split(key, 3)
        bound = 1.0 / (fan_in ** 0.5)
        w = jax.random.uniform(kw, (fan_in, fan_out), jnp.float32, -bound, bound)
        b = jax.random.uniform(kb, (1, fan_out), jnp.float32, -bound, bound)
        params.append((w, b))
    return params


def reference_forward(x, params):
    """Pure-JAX reference for the correctness check."""
    (w1, b1), (w2, b2), (w3, b3), (w4, b4) = params
    h = jnp.maximum(x @ w1 + b1, 0.0)
    h = jnp.maximum(h @ w2 + b2, 0.0)
    h = jnp.maximum(h @ w3 + b3, 0.0)
    p = h @ w4 + b4
    out_dim = w4.shape[1] // 2
    return p[:, :out_dim], jnp.exp(p[:, out_dim:] + EPS)


if __name__ == "__main__":
    # Small shapes consistent with the module: x is [batch, in_dim].
    batch, in_dim, hidden_dim, out_dim = 8, 16, 32, 8

    key = jax.random.PRNGKey(0)
    key, kx = jax.random.split(key)
    x = jax.random.normal(kx, (batch, in_dim), jnp.float32)
    params = init_params(key, in_dim, hidden_dim, out_dim)

    mu_ref, sigma_ref = reference_forward(x, params)

    # f32 matmul path (bit-exact parity with the PyTorch module's f32 numerics).
    mu, sigma = normal_network_forward(x, params, out_dim)
    jax.block_until_ready((mu, sigma))
    assert mu.shape == (batch, out_dim) and sigma.shape == (batch, out_dim)
    assert jnp.allclose(mu, mu_ref, atol=1e-5, rtol=1e-5)
    assert jnp.allclose(sigma, sigma_ref, atol=1e-5, rtol=1e-5)
    assert bool(jnp.all(sigma > 0))

    # bf16 matmul inputs / f32 accumulation (v6e/v7x MXU fast path) — looser tolerance.
    mu_bf, sigma_bf = normal_network_forward(x, params, out_dim,
                                             matmul_dtype=jnp.bfloat16)
    jax.block_until_ready((mu_bf, sigma_bf))
    assert jnp.allclose(mu_bf, mu_ref, atol=5e-2, rtol=5e-2)
    assert jnp.allclose(sigma_bf, sigma_ref, atol=5e-2, rtol=5e-2)
    assert bool(jnp.all(sigma_bf > 0))

    print("KERNEL_OK")
</pallas_src>

<mosaic_0001>
module attributes {stable_mosaic.version = 11 : i64} {
  func.func @normal_network_kernel(%arg0: i32, %arg1: memref<8x128xf32, #tpu.memory_space<vmem>>, %arg2: memref<128x128xf32, #tpu.memory_space<vmem>>, %arg3: memref<1x128xf32, #tpu.memory_space<vmem>>, %arg4: memref<128x128xf32, #tpu.memory_space<vmem>>, %arg5: memref<1x128xf32, #tpu.memory_space<vmem>>, %arg6: memref<128x128xf32, #tpu.memory_space<vmem>>, %arg7: memref<1x128xf32, #tpu.memory_space<vmem>>, %arg8: memref<128x128xf32, #tpu.memory_space<vmem>>, %arg9: memref<1x128xf32, #tpu.memory_space<vmem>>, %arg10: memref<8x128xf32, #tpu.memory_space<vmem>>) attributes {dimension_semantics = [#tpu.dimension_semantics<parallel>], iteration_bounds = array<i64: 1>, scalar_prefetch = 0 : i64, scratch_operands = 0 : i64, tpu.core_type = #tpu.core_type<tc>, window_params = [{transform_indices = @transform_0, window_bounds = array<i64: 8, 128>}, {pipeline_mode = #tpu.pipeline_mode<synchronous>, transform_indices = @transform_1, window_bounds = array<i64: 128, 128>}, {pipeline_mode = #tpu.pipeline_mode<synchronous>, transform_indices = @transform_2, window_bounds = array<i64: 1, 128>}, {pipeline_mode = #tpu.pipeline_mode<synchronous>, transform_indices = @transform_3, window_bounds = array<i64: 128, 128>}, {pipeline_mode = #tpu.pipeline_mode<synchronous>, transform_indices = @transform_4, window_bounds = array<i64: 1, 128>}, {pipeline_mode = #tpu.pipeline_mode<synchronous>, transform_indices = @transform_5, window_bounds = array<i64: 128, 128>}, {pipeline_mode = #tpu.pipeline_mode<synchronous>, transform_indices = @transform_6, window_bounds = array<i64: 1, 128>}, {pipeline_mode = #tpu.pipeline_mode<synchronous>, transform_indices = @transform_7, window_bounds = array<i64: 128, 128>}, {pipeline_mode = #tpu.pipeline_mode<synchronous>, transform_indices = @transform_8, window_bounds = array<i64: 1, 128>}, {transform_indices = @transform_9, window_bounds = array<i64: 8, 128>}]} {
    %c0 = arith.constant 0 : index
    %c0_0 = arith.constant 0 : index
    %0 = vector.load %arg1[%c0, %c0_0] : memref<8x128xf32, #tpu.memory_space<vmem>>, vector<8x128xf32>
    %c0_1 = arith.constant 0 : index
    %c0_2 = arith.constant 0 : index
    %1 = vector.load %arg2[%c0_1, %c0_2] : memref<128x128xf32, #tpu.memory_space<vmem>>, vector<128x128xf32>
    %cst = arith.constant dense<0.000000e+00> : vector<8x128xf32>
    %2 = tpu.matmul %0, %1, %cst {dimension_numbers = #tpu.dot_dimension_numbers<[1], [0], [0], [1], [0, 0, 1, 1], [], []>} : vector<8x128xf32>, vector<128x128xf32>, vector<8x128xf32> -> vector<8x128xf32>
    %c0_3 = arith.constant 0 : index
    %c0_4 = arith.constant 0 : index
    %3 = vector.load %arg3[%c0_3, %c0_4] : memref<1x128xf32, #tpu.memory_space<vmem>>, vector<1x128xf32>
    %4 = vector.broadcast %3 : vector<1x128xf32> to vector<8x128xf32>
    %5 = arith.addf %2, %4 : vector<8x128xf32>
    %cst_5 = arith.constant 0.000000e+00 : f32
    %6 = vector.broadcast %cst_5 : f32 to vector<8x128xf32>
    %7 = arith.maximumf %5, %6 : vector<8x128xf32>
    %c0_6 = arith.constant 0 : index
    %c0_7 = arith.constant 0 : index
    %8 = vector.load %arg4[%c0_6, %c0_7] : memref<128x128xf32, #tpu.memory_space<vmem>>, vector<128x128xf32>
    %cst_8 = arith.constant dense<0.000000e+00> : vector<8x128xf32>
    %9 = tpu.matmul %7, %8, %cst_8 {dimension_numbers = #tpu.dot_dimension_numbers<[1], [0], [0], [1], [0, 0, 1, 1], [], []>} : vector<8x128xf32>, vector<128x128xf32>, vector<8x128xf32> -> vector<8x128xf32>
    %c0_9 = arith.constant 0 : index
    %c0_10 = arith.constant 0 : index
    %10 = vector.load %arg5[%c0_9, %c0_10] : memref<1x128xf32, #tpu.memory_space<vmem>>, vector<1x128xf32>
    %11 = vector.broadcast %10 : vector<1x128xf32> to vector<8x128xf32>
    %12 = arith.addf %9, %11 : vector<8x128xf32>
    %cst_11 = arith.constant 0.000000e+00 : f32
    %13 = vector.broadcast %cst_11 : f32 to vector<8x128xf32>
    %14 = arith.maximumf %12, %13 : vector<8x128xf32>
    %c0_12 = arith.constant 0 : index
    %c0_13 = arith.constant 0 : index
    %15 = vector.load %arg6[%c0_12, %c0_13] : memref<128x128xf32, #tpu.memory_space<vmem>>, vector<128x128xf32>
    %cst_14 = arith.constant dense<0.000000e+00> : vector<8x128xf32>
    %16 = tpu.matmul %14, %15, %cst_14 {dimension_numbers = #tpu.dot_dimension_numbers<[1], [0], [0], [1], [0, 0, 1, 1], [], []>} : vector<8x128xf32>, vector<128x128xf32>, vector<8x128xf32> -> vector<8x128xf32>
    %c0_15 = arith.constant 0 : index
    %c0_16 = arith.constant 0 : index
    %17 = vector.load %arg7[%c0_15, %c0_16] : memref<1x128xf32, #tpu.memory_space<vmem>>, vector<1x128xf32>
    %18 = vector.broadcast %17 : vector<1x128xf32> to vector<8x128xf32>
    %19 = arith.addf %16, %18 : vector<8x128xf32>
    %cst_17 = arith.constant 0.000000e+00 : f32
    %20 = vector.broadcast %cst_17 : f32 to vector<8x128xf32>
    %21 = arith.maximumf %19, %20 : vector<8x128xf32>
    %c0_18 = arith.constant 0 : index
    %c0_19 = arith.constant 0 : index
    %22 = vector.load %arg8[%c0_18, %c0_19] : memref<128x128xf32, #tpu.memory_space<vmem>>, vector<128x128xf32>
    %cst_20 = arith.constant dense<0.000000e+00> : vector<8x128xf32>
    %23 = tpu.matmul %21, %22, %cst_20 {dimension_numbers = #tpu.dot_dimension_numbers<[1], [0], [0], [1], [0, 0, 1, 1], [], []>} : vector<8x128xf32>, vector<128x128xf32>, vector<8x128xf32> -> vector<8x128xf32>
    %c0_21 = arith.constant 0 : index
    %c0_22 = arith.constant 0 : index
    %24 = vector.load %arg9[%c0_21, %c0_22] : memref<1x128xf32, #tpu.memory_space<vmem>>, vector<1x128xf32>
    %25 = vector.broadcast %24 : vector<1x128xf32> to vector<8x128xf32>
    %26 = arith.addf %23, %25 : vector<8x128xf32>
    %27 = tpu.iota {dimensions = array<i32: 1>} : vector<8x128xi32>
    %c8_i32 = arith.constant 8 : i32
    %28 = vector.broadcast %c8_i32 : i32 to vector<8x128xi32>
    %29 = arith.cmpi sge, %27, %28 : vector<8x128xi32>
    %cst_23 = arith.constant 0.000000e+00 : f32
    %30 = vector.broadcast %cst_23 : f32 to vector<8x128xf32>
    %31 = arith.select %29, %26, %30 : vector<8x128xi1>, vector<8x128xf32>
    %cst_24 = arith.constant 9.99999997E-7 : f32
    %32 = vector.broadcast %cst_24 : f32 to vector<8x128xf32>
    %33 = arith.addf %31, %32 : vector<8x128xf32>
    %34 = math.exp %33 : vector<8x128xf32>
    %35 = arith.select %29, %34, %26 : vector<8x128xi1>, vector<8x128xf32>
    %c0_25 = arith.constant 0 : index
    %c0_26 = arith.constant 0 : index
    %36 = vector.load %arg10[%c0_25, %c0_26] : memref<8x128xf32, #tpu.memory_space<vmem>>, vector<8x128xf32>
    tpu.vector_store %arg10[%c0_25, %c0_26], %35 {strides = array<i32>} : memref<8x128xf32, #tpu.memory_space<vmem>>, vector<8x128xf32>,
    return
  }
  func.func @transform_0(%arg0: i32) -> (i32, i32) {
    %c0_i32 = arith.constant 0 : i32
    %c0_i32_0 = arith.constant 0 : i32
    return %arg0, %c0_i32 : i32, i32
  }
  func.func @transform_1(%arg0: i32) -> (i32, i32) {
    %c0_i32 = arith.constant 0 : i32
    %c0_i32_0 = arith.constant 0 : i32
    %c0_i32_1 = arith.constant 0 : i32
    return %c0_i32, %c0_i32_0 : i32, i32
  }
  func.func @transform_2(%arg0: i32) -> (i32, i32) {
    %c0_i32 = arith.constant 0 : i32
    %c0_i32_0 = arith.constant 0 : i32
    %c0_i32_1 = arith.constant 0 : i32
    return %c0_i32, %c0_i32_0 : i32, i32
  }
  func.func @transform_3(%arg0: i32) -> (i32, i32) {
    %c0_i32 = arith.constant 0 : i32
    %c0_i32_0 = arith.constant 0 : i32
    %c0_i32_1 = arith.constant 0 : i32
    return %c0_i32, %c0_i32_0 : i32, i32
  }
  func.func @transform_4(%arg0: i32) -> (i32, i32) {
    %c0_i32 = arith.constant 0 : i32
    %c0_i32_0 = arith.constant 0 : i32
    %c0_i32_1 = arith.constant 0 : i32
    return %c0_i32, %c0_i32_0 : i32, i32
  }
  func.func @transform_5(%arg0: i32) -> (i32, i32) {
    %c0_i32 = arith.constant 0 : i32
    %c0_i32_0 = arith.constant 0 : i32
    %c0_i32_1 = arith.constant 0 : i32
    return %c0_i32, %c0_i32_0 : i32, i32
  }
  func.func @transform_6(%arg0: i32) -> (i32, i32) {
    %c0_i32 = arith.constant 0 : i32
    %c0_i32_0 = arith.constant 0 : i32
    %c0_i32_1 = arith.constant 0 : i32
    return %c0_i32, %c0_i32_0 : i32, i32
  }
  func.func @transform_7(%arg0: i32) -> (i32, i32) {
    %c0_i32 = arith.constant 0 : i32
    %c0_i32_0 = arith.constant 0 : i32
    %c0_i32_1 = arith.constant 0 : i32
    return %c0_i32, %c0_i32_0 : i32, i32
  }
  func.func @transform_8(%arg0: i32) -> (i32, i32) {
    %c0_i32 = arith.constant 0 : i32
    %c0_i32_0 = arith.constant 0 : i32
    %c0_i32_1 = arith.constant 0 : i32
    return %c0_i32, %c0_i32_0 : i32, i32
  }
  func.func @transform_9(%arg0: i32) -> (i32, i32) {
    %c0_i32 = arith.constant 0 : i32
    %c0_i32_0 = arith.constant 0 : i32
    return %arg0, %c0_i32 : i32, i32
  }
}

module attributes {stable_mosaic.version = 11 : i64} {
  func.func @normal_network_kernel(%arg0: i32, %arg1: memref<8x128xf32, #tpu.memory_space<vmem>>, %arg2: memref<128x128xf32, #tpu.memory_space<vmem>>, %arg3: memref<1x128xf32, #tpu.memory_space<vmem>>, %arg4: memref<128x128xf32, #tpu.memory_space<vmem>>, %arg5: memref<1x128xf32, #tpu.memory_space<vmem>>, %arg6: memref<128x128xf32, #tpu.memory_space<vmem>>, %arg7: memref<1x128xf32, #tpu.memory_space<vmem>>, %arg8: memref<128x128xf32, #tpu.memory_space<vmem>>, %arg9: memref<1x128xf32, #tpu.memory_space<vmem>>, %arg10: memref<8x128xf32, #tpu.memory_space<vmem>>) attributes {dimension_semantics = [#tpu.dimension_semantics<parallel>], iteration_bounds = array<i64: 1>, scalar_prefetch = 0 : i64, scratch_operands = 0 : i64, tpu.core_type = #tpu.core_type<tc>, window_params = [{transform_indices = @transform_0, window_bounds = array<i64: 8, 128>}, {pipeline_mode = #tpu.pipeline_mode<synchronous>, transform_indices = @transform_1, window_bounds = array<i64: 128, 128>}, {pipeline_mode = #tpu.pipeline_mode<synchronous>, transform_indices = @transform_2, window_bounds = array<i64: 1, 128>}, {pipeline_mode = #tpu.pipeline_mode<synchronous>, transform_indices = @transform_3, window_bounds = array<i64: 128, 128>}, {pipeline_mode = #tpu.pipeline_mode<synchronous>, transform_indices = @transform_4, window_bounds = array<i64: 1, 128>}, {pipeline_mode = #tpu.pipeline_mode<synchronous>, transform_indices = @transform_5, window_bounds = array<i64: 128, 128>}, {pipeline_mode = #tpu.pipeline_mode<synchronous>, transform_indices = @transform_6, window_bounds = array<i64: 1, 128>}, {pipeline_mode = #tpu.pipeline_mode<synchronous>, transform_indices = @transform_7, window_bounds = array<i64: 128, 128>}, {pipeline_mode = #tpu.pipeline_mode<synchronous>, transform_indices = @transform_8, window_bounds = array<i64: 1, 128>}, {transform_indices = @transform_9, window_bounds = array<i64: 8, 128>}]} {
    %c0 = arith.constant 0 : index
    %c0_0 = arith.constant 0 : index
    %0 = vector.load %arg1[%c0, %c0_0] : memref<8x128xf32, #tpu.memory_space<vmem>>, vector<8x128xf32>
    %c0_1 = arith.constant 0 : index
    %c0_2 = arith.constant 0 : index
    %1 = vector.load %arg2[%c0_1, %c0_2] : memref<128x128xf32, #tpu.memory_space<vmem>>, vector<128x128xf32>
    %cst = arith.constant dense<0.000000e+00> : vector<8x128xf32>
    %2 = tpu.matmul %0, %1, %cst {dimension_numbers = #tpu.dot_dimension_numbers<[1], [0], [0], [1], [0, 0, 1, 1], [], []>} : vector<8x128xf32>, vector<128x128xf32>, vector<8x128xf32> -> vector<8x128xf32>
    %c0_3 = arith.constant 0 : index
    %c0_4 = arith.constant 0 : index
    %3 = vector.load %arg3[%c0_3, %c0_4] : memref<1x128xf32, #tpu.memory_space<vmem>>, vector<1x128xf32>
    %4 = vector.broadcast %3 : vector<1x128xf32> to vector<8x128xf32>
    %5 = arith.addf %2, %4 : vector<8x128xf32>
    %cst_5 = arith.constant 0.000000e+00 : f32
    %6 = vector.broadcast %cst_5 : f32 to vector<8x128xf32>
    %7 = arith.maximumf %5, %6 : vector<8x128xf32>
    %c0_6 = arith.constant 0 : index
    %c0_7 = arith.constant 0 : index
    %8 = vector.load %arg4[%c0_6, %c0_7] : memref<128x128xf32, #tpu.memory_space<vmem>>, vector<128x128xf32>
    %cst_8 = arith.constant dense<0.000000e+00> : vector<8x128xf32>
    %9 = tpu.matmul %7, %8, %cst_8 {dimension_numbers = #tpu.dot_dimension_numbers<[1], [0], [0], [1], [0, 0, 1, 1], [], []>} : vector<8x128xf32>, vector<128x128xf32>, vector<8x128xf32> -> vector<8x128xf32>
    %c0_9 = arith.constant 0 : index
    %c0_10 = arith.constant 0 : index
    %10 = vector.load %arg5[%c0_9, %c0_10] : memref<1x128xf32, #tpu.memory_space<vmem>>, vector<1x128xf32>
    %11 = vector.broadcast %10 : vector<1x128xf32> to vector<8x128xf32>
    %12 = arith.addf %9, %11 : vector<8x128xf32>
    %cst_11 = arith.constant 0.000000e+00 : f32
    %13 = vector.broadcast %cst_11 : f32 to vector<8x128xf32>
    %14 = arith.maximumf %12, %13 : vector<8x128xf32>
    %c0_12 = arith.constant 0 : index
    %c0_13 = arith.constant 0 : index
    %15 = vector.load %arg6[%c0_12, %c0_13] : memref<128x128xf32, #tpu.memory_space<vmem>>, vector<128x128xf32>
    %cst_14 = arith.constant dense<0.000000e+00> : vector<8x128xf32>
    %16 = tpu.matmul %14, %15, %cst_14 {dimension_numbers = #tpu.dot_dimension_numbers<[1], [0], [0], [1], [0, 0, 1, 1], [], []>} : vector<8x128xf32>, vector<128x128xf32>, vector<8x128xf32> -> vector<8x128xf32>
    %c0_15 = arith.constant 0 : index
    %c0_16 = arith.constant 0 : index
    %17 = vector.load %arg7[%c0_15, %c0_16] : memref<1x128xf32, #tpu.memory_space<vmem>>, vector<1x128xf32>
    %18 = vector.broadcast %17 : vector<1x128xf32> to vector<8x128xf32>
    %19 = arith.addf %16, %18 : vector<8x128xf32>
    %cst_17 = arith.constant 0.000000e+00 : f32
    %20 = vector.broadcast %cst_17 : f32 to vector<8x128xf32>
    %21 = arith.maximumf %19, %20 : vector<8x128xf32>
    %c0_18 = arith.constant 0 : index
    %c0_19 = arith.constant 0 : index
    %22 = vector.load %arg8[%c0_18, %c0_19] : memref<128x128xf32, #tpu.memory_space<vmem>>, vector<128x128xf32>
    %cst_20 = arith.constant dense<0.000000e+00> : vector<8x128xf32>
    %23 = tpu.matmul %21, %22, %cst_20 {dimension_numbers = #tpu.dot_dimension_numbers<[1], [0], [0], [1], [0, 0, 1, 1], [], []>} : vector<8x128xf32>, vector<128x128xf32>, vector<8x128xf32> -> vector<8x128xf32>
    %c0_21 = arith.constant 0 : index
    %c0_22 = arith.constant 0 : index
    %24 = vector.load %arg9[%c0_21, %c0_22] : memref<1x128xf32, #tpu.memory_space<vmem>>, vector<1x128xf32>
    %25 = vector.broadcast %24 : vector<1x128xf32> to vector<8x128xf32>
    %26 = arith.addf %23, %25 : vector<8x128xf32>
    %27 = tpu.iota {dimensions = array<i32: 1>} : vector<8x128xi32>
    %c8_i32 = arith.constant 8 : i32
    %28 = vector.broadcast %c8_i32 : i32 to vector<8x128xi32>
    %29 = arith.cmpi sge, %27, %28 : vector<8x128xi32>
    %cst_23 = arith.constant 0.000000e+00 : f32
    %30 = vector.broadcast %cst_23 : f32 to vector<8x128xf32>
    %31 = arith.select %29, %26, %30 : vector<8x128xi1>, vector<8x128xf32>
    %cst_24 = arith.constant 9.99999997E-7 : f32
    %32 = vector.broadcast %cst_24 : f32 to vector<8x128xf32>
    %33 = arith.addf %31, %32 : vector<8x128xf32>
    %34 = math.exp %33 : vector<8x128xf32>
    %35 = arith.select %29, %34, %26 : vector<8x128xi1>, vector<8x128xf32>
    %c0_25 = arith.constant 0 : index
    %c0_26 = arith.constant 0 : index
    %36 = vector.load %arg10[%c0_25, %c0_26] : memref<8x128xf32, #tpu.memory_space<vmem>>, vector<8x128xf32>
    tpu.vector_store %arg10[%c0_25, %c0_26], %35 {strides = array<i32>} : memref<8x128xf32, #tpu.memory_space<vmem>>, vector<8x128xf32>,
    return
  }
  func.func @transform_0(%arg0: i32) -> (i32, i32) {
    %c0_i32 = arith.constant 0 : i32
    %c0_i32_0 = arith.constant 0 : i32
    return %arg0, %c0_i32 : i32, i32
  }
  func.func @transform_1(%arg0: i32) -> (i32, i32) {
    %c0_i32 = arith.constant 0 : i32
    %c0_i32_0 = arith.constant 0 : i32
    %c0_i32_1 = arith.constant 0 : i32
    return %c0_i32, %c0_i32_0 : i32, i32
  }
  func.func @transform_2(%arg0: i32) -> (i32, i32) {
    %c0_i32 = arith.constant 0 : i32
    %c0_i32_0 = arith.constant 0 : i32
    %c0_i32_1 = arith.constant 0 : i32
    return %c0_i32, %c0_i32_0 : i32, i32
  }
  func.func @transform_3(%arg0: i32) -> (i32, i32) {
    %c0_i32 = arith.constant 0 : i32
    %c0_i32_0 = arith.constant 0 : i32
    %c0_i32_1 = arith.constant 0 : i32
    return %c0_i32, %c0_i32_0 : i32, i32
  }
  func.func @transform_4(%arg0: i32) -> (i32, i32) {
    %c0_i32 = arith.constant 0 : i32
    %c0_i32_0 = arith.constant 0 : i32
    %c0_i32_1 = arith.constant 0 : i32
    return %c0_i32, %c0_i32_0 : i32, i32
  }
  func.func @transform_5(%arg0: i32) -> (i32, i32) {
    %c0_i32 = arith.constant 0 : i32
    %c0_i32_0 = arith.constant 0 : i32
    %c0_i32_1 = arith.constant 0 : i32
    return %c0_i32, %c0_i32_0 : i32, i32
  }
  func.func @transform_6(%arg0: i32) -> (i32, i32) {
    %c0_i32 = arith.constant 0 : i32
    %c0_i32_0 = arith.constant 0 : i32
    %c0_i32_1 = arith.constant 0 : i32
    return %c0_i32, %c0_i32_0 : i32, i32
  }
  func.func @transform_7(%arg0: i32) -> (i32, i32) {
    %c0_i32 = arith.constant 0 : i32
    %c0_i32_0 = arith.constant 0 : i32
    %c0_i32_1 = arith.constant 0 : i32
    return %c0_i32, %c0_i32_0 : i32, i32
  }
  func.func @transform_8(%arg0: i32) -> (i32, i32) {
    %c0_i32 = arith.constant 0 : i32
    %c0_i32_0 = arith.constant 0 : i32
    %c0_i32_1 = arith.constant 0 : i32
    return %c0_i32, %c0_i32_0 : i32, i32
  }
  func.func @transform_9(%arg0: i32) -> (i32, i32) {
    %c0_i32 = arith.constant 0 : i32
    %c0_i32_0 = arith.constant 0 : i32
    return %arg0, %c0_i32 : i32, i32
  }
}

</mosaic_0001>

<bundles_post_ra>
// kernel: tpu_custom_call.1
= control target key start
LH: loop header
LB: loop body
LE: loop exit
PB: predicated region body
PF: predicated region fallthrough
CT: control target
= control target key end

     0   :  { %14 = vsyncpa [#allocation3], 0  ;;  %s1027_s0 = inlined_call_operand.hbm [shape: f32[8,128], index: 0, kind: input, shape index: {}]   ;;  %s1028_s1 = inlined_call_operand.hbm [shape: f32[128,128], index: 1, kind: input, shape index: {}]   ;;  %s1029_s2 = inlined_call_operand.vmem [shape: f32[1,128], index: 2, kind: input, shape index: {}]   ;;  %s1030_s3 = inlined_call_operand.hbm [shape: f32[128,128], index: 3, kind: input, shape index: {}]   ;;  %s1031_s4 = inlined_call_operand.vmem [shape: f32[1,128], index: 4, kind: input, shape index: {}]   ;;  %s1032_s5 = inlined_call_operand.hbm [shape: f32[128,128], index: 5, kind: input, shape index: {}]   ;;  %s1033_s6 = inlined_call_operand.vmem [shape: f32[1,128], index: 6, kind: input, shape index: {}]   ;;  %s1034_s7 = inlined_call_operand.hbm [shape: f32[128,128], index: 7, kind: input, shape index: {}]   ;;  %s1035_s8 = inlined_call_operand.vmem [shape: f32[1,128], index: 8, kind: input, shape index: {}]   ;;  %s1036_s9 = inlined_call_operand.hbm [shape: f32[8,128], index: 9, kind: output, shape index: {}]  }
   0x1   :  { %15 = vsyncpa [#allocation6], 0 }
   0x2   :  { %16 = vsyncpa [#allocation9], 0 }
   0x3   :  { %17 = vsyncpa [#allocation4], 0  ;;  %s853_s30 = smov [#allocation5]  }
   0x4   :  { %s33_s10 = sshll.u32 %s853_s30, 4  ;;  %s34_s10 = int_to_ptr.vmem [resolvable:$true] %s33_s10 }
   0x5   :  { %s733_s11 = scalar_lea.vmem %s34_s10, 2048  ;;  %p738_p1 = scmp.lt.s32.totalorder %s34_s10, %s34_s10 }
   0x6   :  { %p734_p0 = scmp.ne.s32.totalorder %s34_s10, %s733_s11  ;;  %p739_p2 = scmp.lt.s32.totalorder %s733_s11, %s733_s11 }
   0x8   :  { %p740_p3 = por %p739_p2, %p738_p1 }
   0xa   :  { %p741_p4 = pnand %p740_p3, %p734_p0 }
   0xc   :  { %744 = shalt.err (!%p741_p4)
}
   0xd   :  { %s854_s12 = smov 128   ;;  %s855_s13 = smov 8  }
   0xe   :  { %39 = dma.hbm_to_vmem [thread:$0]  %s1028_s1, 2048, %s34_s10, [#allocation6], %s854_s12, %s854_s12, %s855_s13  }
   0xf   :  { %s856_s16 = smov [#allocation8]   ;;  %s857_s18 = smov [#allocation2]  }
  0x10   :  { %s61_s17 = sshll.u32 %s856_s16, 4  ;;  %s24_s19 = sshll.u32 %s857_s18, 4  ;;  %s62_s17 = int_to_ptr.vmem [resolvable:$true] %s61_s17  ;;  %s25_s19 = int_to_ptr.vmem [resolvable:$true] %s24_s19 }
  0x11   :  { %s753_s20 = scalar_lea.vmem %s62_s17, 2048  ;;  %p758_p6 = scmp.lt.s32.totalorder %s62_s17, %s62_s17 }
  0x12   :  { %p754_p5 = scmp.ne.s32.totalorder %s62_s17, %s753_s20  ;;  %p759_p7 = scmp.lt.s32.totalorder %s753_s20, %s753_s20 }
  0x14   :  { %p760_p8 = por %p759_p7, %p758_p6 }
  0x16   :  { %p761_p9 = pnand %p760_p8, %p754_p5 }
  0x18   :  { %764 = shalt.err (!%p761_p9)
}
  0x19   :  { %67 = dma.hbm_to_vmem [thread:$0]  %s1032_s5, 2048, %s62_s17, [#allocation9], %s854_s12, %s854_s12, %s855_s13  }
  0x1a   :  { %s773_s1 = scalar_lea.vmem %s25_s19, 128  ;;  %p778_p11 = scmp.lt.s32.totalorder %s25_s19, %s25_s19 }
  0x1b   :  { %p774_p10 = scmp.ne.s32.totalorder %s25_s19, %s773_s1  ;;  %p779_p12 = scmp.lt.s32.totalorder %s773_s1, %s773_s1 }
  0x1d   :  { %p780_p13 = por %p779_p12, %p778_p11 }
  0x1f   :  { %p781_p0 = pnand %p780_p13, %p774_p10 }
  0x21   :  { %784 = shalt.err (!%p781_p0)
}
  0x22   :  { %27 = dma.hbm_to_vmem [thread:$0]  %s1027_s0, 128, %s25_s19, [#allocation3]  }
  0x23   :  { %s858_s25 = smov [#allocation7]   ;;  %s859_s27 = smov [#allocation10]  }
  0x24   :  { %s47_s26 = sshll.u32 %s858_s25, 4  ;;  %s75_s28 = sshll.u32 %s859_s27, 4  ;;  %s48_s26 = int_to_ptr.vmem [resolvable:$true] %s47_s26  ;;  %s76_s28 = int_to_ptr.vmem [resolvable:$true] %s75_s28 }
  0x25   :  { %s793_s29 = scalar_lea.vmem %s48_s26, 2048  ;;  %p798_p2 = scmp.lt.s32.totalorder %s48_s26, %s48_s26 }
  0x26   :  { %p794_p1 = scmp.ne.s32.totalorder %s48_s26, %s793_s29  ;;  %p799_p3 = scmp.lt.s32.totalorder %s793_s29, %s793_s29 }
  0x28   :  { %p800_p4 = por %p799_p3, %p798_p2 }
  0x2a   :  { %p801_p5 = pnand %p800_p4, %p794_p1 }
  0x2c   :  { %804 = shalt.err (!%p801_p5)
}
  0x2d   :  { %53 = dma.hbm_to_vmem [thread:$0]  %s1030_s3, 2048, %s48_s26, [#allocation6], %s854_s12, %s854_s12, %s855_s13  }
  0x2e   :  { %s813_s0 = scalar_lea.vmem %s76_s28, 2048  ;;  %p818_p7 = scmp.lt.s32.totalorder %s76_s28, %s76_s28 }
  0x2f   :  { %p814_p6 = scmp.ne.s32.totalorder %s76_s28, %s813_s0  ;;  %p819_p8 = scmp.lt.s32.totalorder %s813_s0, %s813_s0 }
  0x31   :  { %p820_p9 = por %p819_p8, %p818_p7 }
  0x33   :  { %p821_p10 = pnand %p820_p9, %p814_p6 }
  0x35   :  { %824 = shalt.err (!%p821_p10)
}
  0x36   :  { %81 = dma.hbm_to_vmem [thread:$0]  %s1034_s7, 2048, %s76_s28, [#allocation9], %s854_s12, %s854_s12, %s855_s13  }
  0x37   :  { %845 = dma.done.wait [#allocation3], 128  }
  0x38   :  { %846 = vsyncadd [#allocation3], 4294967168 }
  0x39   :  { %847 = dma.done.wait [#allocation6], 4096  }
  0x3a   :  { %848 = vsyncadd [#allocation6], 4294963200 }
  0x3b   :  { %849 = dma.done.wait [#allocation9], 4096  }
  0x3c   :  { %850 = vsyncadd [#allocation9], 4294963200  ;;  %v860_v0 = vmov 0.0   ;;  %vm861_vm0 = vmmov 0   ;;  %v115_v1 = vld [vmem:[#allocation5 + $0x78] sm:$0xff]  ;;  %v114_v2 = vld [vmem:[#allocation5 + $0x70] sm:$0xff] }
  0x3d   :  { %573 = vmatprep.subr.mxu0 %v860_v0  ;;  %605 = vmatprep.mubr.msk.f32.mxu0 %vm861_vm0, %v860_v0  ;;  %v113_v3 = vld [vmem:[#allocation5 + $0x68] sm:$0xff]  ;;  %v112_v4 = vld [vmem:[#allocation5 + $0x60] sm:$0xff]  ;;  %v209_v5 = vld [vmem:[#allocation7 + $0x78] sm:$0xff] }
  0x3e   :  { %608 = vmatprep.subr.mxu1 %v860_v0  ;;  %640 = vmatprep.mubr.msk.f32.mxu1 %vm861_vm0, %v860_v0  ;;  %v111_v6 = vld [vmem:[#allocation5 + $0x58] sm:$0xff]  ;;  %v208_v7 = vld [vmem:[#allocation7 + $0x70] sm:$0xff]  ;;  %v207_v8 = vld [vmem:[#allocation7 + $0x68] sm:$0xff] }
  0x3f   :  { %574 = vmatpush3.msra.mxu0 %v115_v1  ;;  %609 = vmatpush3.msra.mxu1 %v209_v5  ;;  %v110_v9 = vld [vmem:[#allocation5 + $0x50] sm:$0xff]  ;;  %v206_v10 = vld [vmem:[#allocation7 + $0x60] sm:$0xff]  ;;  %v109_v11 = vld [vmem:[#allocation5 + $0x48] sm:$0xff] }
  0x40   :  { %575 = vmatprep.subr.mxu0 %v860_v0  ;;  %610 = vmatprep.subr.mxu1 %v860_v0  ;;  %v205_v12 = vld [vmem:[#allocation7 + $0x58] sm:$0xff]  ;;  %v108_v13 = vld [vmem:[#allocation5 + $0x40] sm:$0xff]  ;;  %v204_v14 = vld [vmem:[#allocation7 + $0x50] sm:$0xff] }
  0x41   :  { %576 = vmatpush3.msra.mxu0 %v114_v2  ;;  %611 = vmatpush3.msra.mxu1 %v208_v7  ;;  %v107_v15 = vld [vmem:[#allocation5 + $0x38] sm:$0xff]  ;;  %v203_v16 = vld [vmem:[#allocation7 + $0x48] sm:$0xff]  ;;  %v106_v17 = vld [vmem:[#allocation5 + $0x30] sm:$0xff] }
  0x42   :  { %577 = vmatprep.subr.mxu0 %v860_v0  ;;  %612 = vmatprep.subr.mxu1 %v860_v0  ;;  %v202_v18 = vld [vmem:[#allocation7 + $0x40] sm:$0xff]  ;;  %v105_v19 = vld [vmem:[#allocation5 + $0x28] sm:$0xff]  ;;  %v201_v20 = vld [vmem:[#allocation7 + $0x38] sm:$0xff] }
  0x43   :  { %578 = vmatpush3.msra.mxu0 %v113_v3  ;;  %613 = vmatpush3.msra.mxu1 %v207_v8  ;;  %v104_v21 = vld [vmem:[#allocation5 + $0x20] sm:$0xff]  ;;  %v200_v22 = vld [vmem:[#allocation7 + $0x30] sm:$0xff]  ;;  %v103_v23 = vld [vmem:[#allocation5 + $0x18] sm:$0xff] }
  0x44   :  { %579 = vmatprep.subr.mxu0 %v860_v0  ;;  %614 = vmatprep.subr.mxu1 %v860_v0  ;;  %v199_v24 = vld [vmem:[#allocation7 + $0x28] sm:$0xff]  ;;  %v102_v25 = vld [vmem:[#allocation5 + $0x10] sm:$0xff]  ;;  %v198_v26 = vld [vmem:[#allocation7 + $0x20] sm:$0xff] }
  0x45   :  { %580 = vmatpush3.msra.mxu0 %v112_v4  ;;  %615 = vmatpush3.msra.mxu1 %v206_v10  ;;  %v101_v27 = vld [vmem:[#allocation5 + $0x8] sm:$0xff]  ;;  %v197_v28 = vld [vmem:[#allocation7 + $0x18] sm:$0xff]  ;;  %v100_v29 = vld [vmem:[#allocation5] sm:$0xff] }
  0x46   :  { %581 = vmatprep.subr.mxu0 %v860_v0  ;;  %616 = vmatprep.subr.mxu1 %v860_v0  ;;  %v99_v30 = vld [vmem:[#allocation2] sm:$0xff]  ;;  %v196_v31 = vld [vmem:[#allocation7 + $0x10] sm:$0xff]  ;;  %v195_v32 = vld [vmem:[#allocation7 + $0x8] sm:$0xff] }
  0x47   :  { %582 = vmatpush3.msra.mxu0 %v111_v6  ;;  %617 = vmatpush3.msra.mxu1 %v205_v12  ;;  %v194_v33 = vld [vmem:[#allocation7] sm:$0xff]  ;;  %v303_v34 = vld [vmem:[#allocation8 + $0x78] sm:$0xff]  ;;  %v302_v35 = vld [vmem:[#allocation8 + $0x70] sm:$0xff] }
  0x48   :  { %583 = vmatprep.subr.mxu0 %v860_v0  ;;  %618 = vmatprep.subr.mxu1 %v860_v0  ;;  %v301_v36 = vld [vmem:[#allocation8 + $0x68] sm:$0xff]  ;;  %v300_v37 = vld [vmem:[#allocation8 + $0x60] sm:$0xff]  ;;  %v299_v38 = vld [vmem:[#allocation8 + $0x58] sm:$0xff] }
  0x49   :  { %584 = vmatpush3.msra.mxu0 %v110_v9  ;;  %619 = vmatpush3.msra.mxu1 %v204_v14  ;;  %v298_v39 = vld [vmem:[#allocation8 + $0x50] sm:$0xff]  ;;  %v297_v40 = vld [vmem:[#allocation8 + $0x48] sm:$0xff]  ;;  %v296_v41 = vld [vmem:[#allocation8 + $0x40] sm:$0xff] }
  0x4a   :  { %585 = vmatprep.subr.mxu0 %v860_v0  ;;  %620 = vmatprep.subr.mxu1 %v860_v0  ;;  %v295_v42 = vld [vmem:[#allocation8 + $0x38] sm:$0xff]  ;;  %v294_v43 = vld [vmem:[#allocation8 + $0x30] sm:$0xff]  ;;  %v293_v44 = vld [vmem:[#allocation8 + $0x28] sm:$0xff] }
  0x4b   :  { %586 = vmatpush3.msra.mxu0 %v109_v11  ;;  %621 = vmatpush3.msra.mxu1 %v203_v16  ;;  %v292_v45 = vld [vmem:[#allocation8 + $0x20] sm:$0xff]  ;;  %v291_v46 = vld [vmem:[#allocation8 + $0x18] sm:$0xff]  ;;  %v290_v52 = vld [vmem:[#allocation8 + $0x10] sm:$0xff] }
  0x4c   :  { %587 = vmatprep.subr.mxu0 %v860_v0  ;;  %622 = vmatprep.subr.mxu1 %v860_v0  ;;  %v501_v47 = vld [vmem:[%s1029_s2] ss:$0 sm:$0xff]  ;;  %v289_v53 = vld [vmem:[#allocation8 + $0x8] sm:$0xff]  ;;  %v288_v54 = vld [vmem:[#allocation8] sm:$0xff] }
  0x4d   :  { %588 = vmatpush3.msra.mxu0 %v108_v13  ;;  %623 = vmatpush3.msra.mxu1 %v202_v18  ;;  %v397_v55 = vld [vmem:[#allocation10 + $0x78] sm:$0xff]  ;;  %v396_v56 = vld [vmem:[#allocation10 + $0x70] sm:$0xff]  ;;  %v395_v57 = vld [vmem:[#allocation10 + $0x68] sm:$0xff]  ;;  %v475_v18 = vlaneseq }
  0x4e   :  { %589 = vmatprep.subr.mxu0 %v860_v0  ;;  %624 = vmatprep.subr.mxu1 %v860_v0  ;;  %v394_v58 = vld [vmem:[#allocation10 + $0x60] sm:$0xff]  ;;  %v393_v59 = vld [vmem:[#allocation10 + $0x58] sm:$0xff]  ;;  %v392_v60 = vld [vmem:[#allocation10 + $0x50] sm:$0xff] }
  0x4f   :  { %590 = vmatpush3.msra.mxu0 %v107_v15  ;;  %625 = vmatpush3.msra.mxu1 %v201_v20  ;;  %v391_v61 = vld [vmem:[#allocation10 + $0x48] sm:$0xff]  ;;  %v390_v62 = vld [vmem:[#allocation10 + $0x40] sm:$0xff]  ;;  %v389_v63 = vld [vmem:[#allocation10 + $0x38] sm:$0xff] }
  0x50   :  { %591 = vmatprep.subr.mxu0 %v860_v0  ;;  %626 = vmatprep.subr.mxu1 %v860_v0  ;;  %v388_v1 = vld [vmem:[#allocation10 + $0x30] sm:$0xff]  ;;  %v387_v2 = vld [vmem:[#allocation10 + $0x28] sm:$0xff]  ;;  %v386_v3 = vld [vmem:[#allocation10 + $0x20] sm:$0xff] }
  0x51   :  { %592 = vmatpush3.msra.mxu0 %v106_v17  ;;  %627 = vmatpush3.msra.mxu1 %v200_v22  ;;  %v385_v4 = vld [vmem:[#allocation10 + $0x18] sm:$0xff]  ;;  %v384_v10 = vld [vmem:[#allocation10 + $0x10] sm:$0xff]  ;;  %v383_v11 = vld [vmem:[#allocation10 + $0x8] sm:$0xff] }
  0x52   :  { %593 = vmatprep.subr.mxu0 %v860_v0  ;;  %628 = vmatprep.subr.mxu1 %v860_v0  ;;  %v502_v5 = vld [vmem:[%s1031_s4] ss:$0 sm:$0xff]  ;;  %v382_v12 = vld [vmem:[#allocation10] sm:$0xff] }
  0x53   :  { %594 = vmatpush3.msra.mxu0 %v105_v19  ;;  %629 = vmatpush3.msra.mxu1 %v199_v24  ;;  %v503_v13 = vld [vmem:[%s1033_s6] ss:$0 sm:$0xff]  ;;  %v476_v19 = vand.u32 127, %v475_v18  ;;  %s862_s6 = smov [#allocation11]  }
  0x54   :  { %595 = vmatprep.subr.mxu0 %v860_v0  ;;  %630 = vmatprep.subr.mxu1 %v860_v0  ;;  %v504_v20 = vld [vmem:[%s1035_s8] ss:$0 sm:$0xff]  ;;  %s490_s16 = sshll.u32 %s862_s6, 4  ;;  %s491_s16 = int_to_ptr.vmem [resolvable:$true] %s490_s16 }
  0x55   :  { %596 = vmatpush3.msra.mxu0 %v104_v21  ;;  %631 = vmatpush3.msra.mxu1 %v198_v26  ;;  %vm477_vm1 = vcmp.ge.s32.totalorder %v476_v19, 8  ;;  %s825_s17 = scalar_lea.vmem %s491_s16, 128  ;;  %p830_p12 = scmp.lt.s32.totalorder %s491_s16, %s491_s16 }
  0x56   :  { %597 = vmatprep.subr.mxu0 %v860_v0  ;;  %632 = vmatprep.subr.mxu1 %v860_v0  ;;  %p826_p11 = scmp.ne.s32.totalorder %s491_s16, %s825_s17  ;;  %p831_p13 = scmp.lt.s32.totalorder %s825_s17, %s825_s17 }
  0x57   :  { %598 = vmatpush3.msra.mxu0 %v103_v23  ;;  %633 = vmatpush3.msra.mxu1 %v197_v28 }
  0x58   :  { %599 = vmatprep.subr.mxu0 %v860_v0  ;;  %634 = vmatprep.subr.mxu1 %v860_v0  ;;  %p832_p0 = por %p831_p13, %p830_p12 }
  0x59   :  { %600 = vmatpush3.msra.mxu0 %v102_v25  ;;  %635 = vmatpush3.msra.mxu1 %v196_v31 }
  0x5a   :  { %601 = vmatprep.subr.mxu0 %v860_v0  ;;  %636 = vmatprep.subr.mxu1 %v860_v0  ;;  %p833_p1 = pnand %p832_p0, %p826_p11 }
  0x5b   :  { %602 = vmatpush3.msra.mxu0 %v101_v27  ;;  %637 = vmatpush3.msra.mxu1 %v195_v32 }
  0x5c   :  { %603 = vmatprep.subr.mxu0 %v860_v0  ;;  %638 = vmatprep.subr.mxu1 %v860_v0 }
  0x5d   :  { %604 = vmatpush3.msra.mxu0 %v100_v29  ;;  %639 = vmatpush3.msra.mxu1 %v194_v33 }
  0x5e   :  { %606 = vmatmul.mubr.f32.vlgmr.msra.gmra.mxu0 %v99_v30  ;;  %643 = vmatprep.subr.mxu0 %v860_v0 }
  0x5f   :  { %675 = vmatprep.mubr.msk.f32.mxu0 %vm861_vm0, %v860_v0  ;;  %678 = vmatprep.subr.mxu1 %v860_v0 }
  0x60   :  { %644 = vmatpush3.msra.mxu0 %v303_v34 }
  0x61   :  { %645 = vmatprep.subr.mxu0 %v860_v0 }
  0x62   :  { %646 = vmatpush3.msra.mxu0 %v302_v35 }
  0x63   :  { %647 = vmatprep.subr.mxu0 %v860_v0 }
  0x64   :  { %648 = vmatpush3.msra.mxu0 %v301_v36 }
  0x65   :  { %649 = vmatprep.subr.mxu0 %v860_v0 }
  0x66   :  { %650 = vmatpush3.msra.mxu0 %v300_v37 }
  0x67   :  { %651 = vmatprep.subr.mxu0 %v860_v0 }
  0x68   :  { %652 = vmatpush3.msra.mxu0 %v299_v38 }
  0x69   :  { %653 = vmatprep.subr.mxu0 %v860_v0 }
  0x6a   :  { %654 = vmatpush3.msra.mxu0 %v298_v39 }
  0x6b   :  { %655 = vmatprep.subr.mxu0 %v860_v0 }
  0x6c   :  { %656 = vmatpush3.msra.mxu0 %v297_v40 }
  0x6d   :  { %657 = vmatprep.subr.mxu0 %v860_v0 }
  0x6e   :  { %658 = vmatpush3.msra.mxu0 %v296_v41 }
  0x6f   :  { %659 = vmatprep.subr.mxu0 %v860_v0 }
  0x70   :  { %660 = vmatpush3.msra.mxu0 %v295_v42 }
  0x71   :  { %661 = vmatprep.subr.mxu0 %v860_v0 }
  0x72   :  { %662 = vmatpush3.msra.mxu0 %v294_v43 }
  0x73   :  { %663 = vmatprep.subr.mxu0 %v860_v0 }
  0x74   :  { %664 = vmatpush3.msra.mxu0 %v293_v44 }
  0x75   :  { %665 = vmatprep.subr.mxu0 %v860_v0 }
  0x76   :  { %666 = vmatpush3.msra.mxu0 %v292_v45 }
  0x77   :  { %667 = vmatprep.subr.mxu0 %v860_v0 }
  0x78   :  { %668 = vmatpush3.msra.mxu0 %v291_v46 }
  0x79   :  { %669 = vmatprep.subr.mxu0 %v860_v0 }
  0x7a   :  { %670 = vmatpush3.msra.mxu0 %v290_v52 }
  0x7b   :  { %671 = vmatprep.subr.mxu0 %v860_v0 }
  0x7c   :  { %672 = vmatpush3.msra.mxu0 %v289_v53 }
  0x7d   :  { %673 = vmatprep.subr.mxu0 %v860_v0 }
  0x7e   :  { %674 = vmatpush3.msra.mxu0 %v288_v54 }
 0x11e   :  { %v189_v48 = vpop.f32.mrf.mxu0 }
 0x11f   :  { %v190_v49 = vadd.f32 %v501_v47, %v189_v48 }
 0x120   :  { %v607_v50 = vpop.f32.mrf.mxu0 }
 0x121   :  { %v193_v51 = vmax.f32 %v190_v49, 0.0 }
 0x123   :  { %641 = vmatmul.mubr.f32.vlgmr.msra.gmra.mxu1 %v193_v51 }
 0x124   :  { %710 = vmatprep.mubr.msk.f32.mxu1 %vm861_vm0, %v860_v0  ;;  %679 = vmatpush3.msra.mxu1 %v397_v55 }
 0x125   :  { %680 = vmatprep.subr.mxu1 %v860_v0 }
 0x126   :  { %681 = vmatpush3.msra.mxu1 %v396_v56 }
 0x127   :  { %682 = vmatprep.subr.mxu1 %v860_v0 }
 0x128   :  { %683 = vmatpush3.msra.mxu1 %v395_v57 }
 0x129   :  { %684 = vmatprep.subr.mxu1 %v860_v0 }
 0x12a   :  { %685 = vmatpush3.msra.mxu1 %v394_v58 }
 0x12b   :  { %686 = vmatprep.subr.mxu1 %v860_v0 }
 0x12c   :  { %687 = vmatpush3.msra.mxu1 %v393_v59 }
 0x12d   :  { %688 = vmatprep.subr.mxu1 %v860_v0 }
 0x12e   :  { %689 = vmatpush3.msra.mxu1 %v392_v60 }
 0x12f   :  { %690 = vmatprep.subr.mxu1 %v860_v0 }
 0x130   :  { %691 = vmatpush3.msra.mxu1 %v391_v61 }
 0x131   :  { %692 = vmatprep.subr.mxu1 %v860_v0 }
 0x132   :  { %693 = vmatpush3.msra.mxu1 %v390_v62 }
 0x133   :  { %694 = vmatprep.subr.mxu1 %v860_v0 }
 0x134   :  { %695 = vmatpush3.msra.mxu1 %v389_v63 }
 0x135   :  { %696 = vmatprep.subr.mxu1 %v860_v0 }
 0x136   :  { %697 = vmatpush3.msra.mxu1 %v388_v1 }
 0x137   :  { %698 = vmatprep.subr.mxu1 %v860_v0 }
 0x138   :  { %699 = vmatpush3.msra.mxu1 %v387_v2 }
 0x139   :  { %700 = vmatprep.subr.mxu1 %v860_v0 }
 0x13a   :  { %701 = vmatpush3.msra.mxu1 %v386_v3 }
 0x13b   :  { %702 = vmatprep.subr.mxu1 %v860_v0 }
 0x13c   :  { %703 = vmatpush3.msra.mxu1 %v385_v4 }
 0x13d   :  { %704 = vmatprep.subr.mxu1 %v860_v0 }
 0x13e   :  { %705 = vmatpush3.msra.mxu1 %v384_v10 }
 0x13f   :  { %706 = vmatprep.subr.mxu1 %v860_v0 }
 0x140   :  { %707 = vmatpush3.msra.mxu1 %v383_v11 }
 0x141   :  { %708 = vmatprep.subr.mxu1 %v860_v0 }
 0x142   :  { %709 = vmatpush3.msra.mxu1 %v382_v12 }
 0x1e3   :  { %v283_v6 = vpop.f32.mrf.mxu1 }
 0x1e4   :  { %v284_v7 = vadd.f32 %v502_v5, %v283_v6 }
 0x1e5   :  { %v642_v8 = vpop.f32.mrf.mxu1 }
 0x1e6   :  { %v287_v9 = vmax.f32 %v284_v7, 0.0 }
 0x1e8   :  { %676 = vmatmul.mubr.f32.vlgmr.msra.gmra.mxu0 %v287_v9 }
 0x2a8   :  { %v377_v14 = vpop.f32.mrf.mxu0 }
 0x2a9   :  { %v378_v15 = vadd.f32 %v503_v13, %v377_v14 }
 0x2aa   :  { %v677_v16 = vpop.f32.mrf.mxu0 }
 0x2ab   :  { %v381_v17 = vmax.f32 %v378_v15, 0.0 }
 0x2ad   :  { %711 = vmatmul.mubr.f32.vlgmr.msra.gmra.mxu1 %v381_v17 }
 0x36d   :  { %v471_v21 = vpop.f32.mrf.mxu1 }
 0x36e   :  { %v472_v0 = vadd.f32 %v504_v20, %v471_v21 }
 0x36f   :  { %v712_v22 = vpop.f32.mrf.mxu1 }
 0x370   :  { %v478_v23 = vsel %vm477_vm1, %v472_v0, 0.0 }
 0x371   :  { %v479_v24 = vadd.f32 1e-06, %v478_v23 }
 0x373   :  { %v480_v25 = vmul.f32 1.442695, %v479_v24 }
 0x375   :  { %723 = vpow2.f32 %v480_v25 }
 0x382   :  { %v724_v26 = vpop.eup %723 }
 0x383   :  { %v482_v27 = vsel %vm477_vm1, %v724_v26, %v472_v0 }
 0x384   :  { %483 = vst [vmem:[#allocation11] sm:$0xff] %v482_v27 }
 0x385   :  { %836 = shalt.err (!%p833_p1)
}
 0x386   :  { %493 = dma.vmem_to_hbm [thread:$0]  %s491_s16, 128, %s1036_s9, [#allocation4]  }
 0x387   :  { %851 = dma.done.wait [#allocation4], 128  }
 0x388   :  { %852 = vsyncadd [#allocation4], 4294967168 }
 0x389   :  { %497 = vsyncpa [#allocation3], 1 }
 0x38a   :  { %498 = vsyncpa [#allocation6], 1 }
 0x38b   :  { %499 = vsyncpa [#allocation9], 1 }
 0x38c   :  { %500 = vsyncpa [#allocation4], 1 }

// kernel: tpu_custom_call.1
= control target key start
LH: loop header
LB: loop body
LE: loop exit
PB: predicated region body
PF: predicated region fallthrough
CT: control target
= control target key end

     0   :  { %14 = vsyncpa [#allocation3], 0  ;;  %s1027_s0 = inlined_call_operand.hbm [shape: f32[8,128], index: 0, kind: input, shape index: {}]   ;;  %s1028_s1 = inlined_call_operand.hbm [shape: f32[128,128], index: 1, kind: input, shape index: {}]   ;;  %s1029_s2 = inlined_call_operand.vmem [shape: f32[1,128], index: 2, kind: input, shape index: {}]   ;;  %s1030_s3 = inlined_call_operand.hbm [shape: f32[128,128], index: 3, kind: input, shape index: {}]   ;;  %s1031_s4 = inlined_call_operand.vmem [shape: f32[1,128], index: 4, kind: input, shape index: {}]   ;;  %s1032_s5 = inlined_call_operand.hbm [shape: f32[128,128], index: 5, kind: input, shape index: {}]   ;;  %s1033_s6 = inlined_call_operand.vmem [shape: f32[1,128], index: 6, kind: input, shape index: {}]   ;;  %s1034_s7 = inlined_call_operand.hbm [shape: f32[128,128], index: 7, kind: input, shape index: {}]   ;;  %s1035_s8 = inlined_call_operand.vmem [shape: f32[1,128], index: 8, kind: input, shape index: {}]   ;;  %s1036_s9 = inlined_call_operand.hbm [shape: f32[8,128], index: 9, kind: output, shape index: {}]  }
   0x1   :  { %15 = vsyncpa [#allocation6], 0 }
   0x2   :  { %16 = vsyncpa [#allocation9], 0 }
   0x3   :  { %17 = vsyncpa [#allocation4], 0  ;;  %s853_s30 = smov [#allocation5]  }
   0x4   :  { %s33_s10 = sshll.u32 %s853_s30, 4  ;;  %s34_s10 = int_to_ptr.vmem [resolvable:$true] %s33_s10 }
   0x5   :  { %s733_s11 = scalar_lea.vmem %s34_s10, 2048  ;;  %p738_p1 = scmp.lt.s32.totalorder %s34_s10, %s34_s10 }
   0x6   :  { %p734_p0 = scmp.ne.s32.totalorder %s34_s10, %s733_s11  ;;  %p739_p2 = scmp.lt.s32.totalorder %s733_s11, %s733_s11 }
   0x8   :  { %p740_p3 = por %p739_p2, %p738_p1 }
   0xa   :  { %p741_p4 = pnand %p740_p3, %p734_p0 }
   0xc   :  { %744 = shalt.err (!%p741_p4)
}
   0xd   :  { %s854_s12 = smov 128   ;;  %s855_s13 = smov 8  }
   0xe   :  { %39 = dma.hbm_to_vmem [thread:$0]  %s1028_s1, 2048, %s34_s10, [#allocation6], %s854_s12, %s854_s12, %s855_s13  }
   0xf   :  { %s856_s16 = smov [#allocation8]   ;;  %s857_s18 = smov [#allocation2]  }
  0x10   :  { %s61_s17 = sshll.u32 %s856_s16, 4  ;;  %s24_s19 = sshll.u32 %s857_s18, 4  ;;  %s62_s17 = int_to_ptr.vmem [resolvable:$true] %s61_s17  ;;  %s25_s19 = int_to_ptr.vmem [resolvable:$true] %s24_s19 }
  0x11   :  { %s753_s20 = scalar_lea.vmem %s62_s17, 2048  ;;  %p758_p6 = scmp.lt.s32.totalorder %s62_s17, %s62_s17 }
  0x12   :  { %p754_p5 = scmp.ne.s32.totalorder %s62_s17, %s753_s20  ;;  %p759_p7 = scmp.lt.s32.totalorder %s753_s20, %s753_s20 }
  0x14   :  { %p760_p8 = por %p759_p7, %p758_p6 }
  0x16   :  { %p761_p9 = pnand %p760_p8, %p754_p5 }
  0x18   :  { %764 = shalt.err (!%p761_p9)
}
  0x19   :  { %67 = dma.hbm_to_vmem [thread:$0]  %s1032_s5, 2048, %s62_s17, [#allocation9], %s854_s12, %s854_s12, %s855_s13  }
  0x1a   :  { %s773_s1 = scalar_lea.vmem %s25_s19, 128  ;;  %p778_p11 = scmp.lt.s32.totalorder %s25_s19, %s25_s19 }
  0x1b   :  { %p774_p10 = scmp.ne.s32.totalorder %s25_s19, %s773_s1  ;;  %p779_p12 = scmp.lt.s32.totalorder %s773_s1, %s773_s1 }
  0x1d   :  { %p780_p13 = por %p779_p12, %p778_p11 }
  0x1f   :  { %p781_p0 = pnand %p780_p13, %p774_p10 }
  0x21   :  { %784 = shalt.err (!%p781_p0)
}
  0x22   :  { %27 = dma.hbm_to_vmem [thread:$0]  %s1027_s0, 128, %s25_s19, [#allocation3]  }
  0x23   :  { %s858_s25 = smov [#allocation7]   ;;  %s859_s27 = smov [#allocation10]  }
  0x24   :  { %s47_s26 = sshll.u32 %s858_s25, 4  ;;  %s75_s28 = sshll.u32 %s859_s27, 4  ;;  %s48_s26 = int_to_ptr.vmem [resolvable:$true] %s47_s26  ;;  %s76_s28 = int_to_ptr.vmem [resolvable:$true] %s75_s28 }
  0x25   :  { %s793_s29 = scalar_lea.vmem %s48_s26, 2048  ;;  %p798_p2 = scmp.lt.s32.totalorder %s48_s26, %s48_s26 }
  0x26   :  { %p794_p1 = scmp.ne.s32.totalorder %s48_s26, %s793_s29  ;;  %p799_p3 = scmp.lt.s32.totalorder %s793_s29, %s793_s29 }
  0x28   :  { %p800_p4 = por %p799_p3, %p798_p2 }
  0x2a   :  { %p801_p5 = pnand %p800_p4, %p794_p1 }
  0x2c   :  { %804 = shalt.err (!%p801_p5)
}
  0x2d   :  { %53 = dma.hbm_to_vmem [thread:$0]  %s1030_s3, 2048, %s48_s26, [#allocation6], %s854_s12, %s854_s12, %s855_s13  }
  0x2e   :  { %s813_s0 = scalar_lea.vmem %s76_s28, 2048  ;;  %p818_p7 = scmp.lt.s32.totalorder %s76_s28, %s76_s28 }
  0x2f   :  { %p814_p6 = scmp.ne.s32.totalorder %s76_s28, %s813_s0  ;;  %p819_p8 = scmp.lt.s32.totalorder %s813_s0, %s813_s0 }
  0x31   :  { %p820_p9 = por %p819_p8, %p818_p7 }
  0x33   :  { %p821_p10 = pnand %p820_p9, %p814_p6 }
  0x35   :  { %824 = shalt.err (!%p821_p10)
}
  0x36   :  { %81 = dma.hbm_to_vmem [thread:$0]  %s1034_s7, 2048, %s76_s28, [#allocation9], %s854_s12, %s854_s12, %s855_s13  }
  0x37   :  { %845 = dma.done.wait [#allocation3], 128  }
  0x38   :  { %846 = vsyncadd [#allocation3], 4294967168 }
  0x39   :  { %847 = dma.done.wait [#allocation6], 4096  }
  0x3a   :  { %848 = vsyncadd [#allocation6], 4294963200 }
  0x3b   :  { %849 = dma.done.wait [#allocation9], 4096  }
  0x3c   :  { %850 = vsyncadd [#allocation9], 4294963200  ;;  %v860_v0 = vmov 0.0   ;;  %vm861_vm0 = vmmov 0   ;;  %v115_v1 = vld [vmem:[#allocation5 + $0x78] sm:$0xff]  ;;  %v114_v2 = vld [vmem:[#allocation5 + $0x70] sm:$0xff] }
  0x3d   :  { %573 = vmatprep.subr.mxu0 %v860_v0  ;;  %605 = vmatprep.mubr.msk.f32.mxu0 %vm861_vm0, %v860_v0  ;;  %v113_v3 = vld [vmem:[#allocation5 + $0x68] sm:$0xff]  ;;  %v112_v4 = vld [vmem:[#allocation5 + $0x60] sm:$0xff]  ;;  %v209_v5 = vld [vmem:[#allocation7 + $0x78] sm:$0xff] }
  0x3e   :  { %608 = vmatprep.subr.mxu1 %v860_v0  ;;  %640 = vmatprep.mubr.msk.f32.mxu1 %vm861_vm0, %v860_v0  ;;  %v111_v6 = vld [vmem:[#allocation5 + $0x58] sm:$0xff]  ;;  %v208_v7 = vld [vmem:[#allocation7 + $0x70] sm:$0xff]  ;;  %v207_v8 = vld [vmem:[#allocation7 + $0x68] sm:$0xff] }
  0x3f   :  { %574 = vmatpush3.msra.mxu0 %v115_v1  ;;  %609 = vmatpush3.msra.mxu1 %v209_v5  ;;  %v110_v9 = vld [vmem:[#allocation5 + $0x50] sm:$0xff]  ;;  %v206_v10 = vld [vmem:[#allocation7 + $0x60] sm:$0xff]  ;;  %v109_v11 = vld [vmem:[#allocation5 + $0x48] sm:$0xff] }
  0x40   :  { %575 = vmatprep.subr.mxu0 %v860_v0  ;;  %610 = vmatprep.subr.mxu1 %v860_v0  ;;  %v205_v12 = vld [vmem:[#allocation7 + $0x58] sm:$0xff]  ;;  %v108_v13 = vld [vmem:[#allocation5 + $0x40] sm:$0xff]  ;;  %v204_v14 = vld [vmem:[#allocation7 + $0x50] sm:$0xff] }
  0x41   :  { %576 = vmatpush3.msra.mxu0 %v114_v2  ;;  %611 = vmatpush3.msra.mxu1 %v208_v7  ;;  %v107_v15 = vld [vmem:[#allocation5 + $0x38] sm:$0xff]  ;;  %v203_v16 = vld [vmem:[#allocation7 + $0x48] sm:$0xff]  ;;  %v106_v17 = vld [vmem:[#allocation5 + $0x30] sm:$0xff] }
  0x42   :  { %577 = vmatprep.subr.mxu0 %v860_v0  ;;  %612 = vmatprep.subr.mxu1 %v860_v0  ;;  %v202_v18 = vld [vmem:[#allocation7 + $0x40] sm:$0xff]  ;;  %v105_v19 = vld [vmem:[#allocation5 + $0x28] sm:$0xff]  ;;  %v201_v20 = vld [vmem:[#allocation7 + $0x38] sm:$0xff] }
  0x43   :  { %578 = vmatpush3.msra.mxu0 %v113_v3  ;;  %613 = vmatpush3.msra.mxu1 %v207_v8  ;;  %v104_v21 = vld [vmem:[#allocation5 + $0x20] sm:$0xff]  ;;  %v200_v22 = vld [vmem:[#allocation7 + $0x30] sm:$0xff]  ;;  %v103_v23 = vld [vmem:[#allocation5 + $0x18] sm:$0xff] }
  0x44   :  { %579 = vmatprep.subr.mxu0 %v860_v0  ;;  %614 = vmatprep.subr.mxu1 %v860_v0  ;;  %v199_v24 = vld [vmem:[#allocation7 + $0x28] sm:$0xff]  ;;  %v102_v25 = vld [vmem:[#allocation5 + $0x10] sm:$0xff]  ;;  %v198_v26 = vld [vmem:[#allocation7 + $0x20] sm:$0xff] }
  0x45   :  { %580 = vmatpush3.msra.mxu0 %v112_v4  ;;  %615 = vmatpush3.msra.mxu1 %v206_v10  ;;  %v101_v27 = vld [vmem:[#allocation5 + $0x8] sm:$0xff]  ;;  %v197_v28 = vld [vmem:[#allocation7 + $0x18] sm:$0xff]  ;;  %v100_v29 = vld [vmem:[#allocation5] sm:$0xff] }
  0x46   :  { %581 = vmatprep.subr.mxu0 %v860_v0  ;;  %616 = vmatprep.subr.mxu1 %v860_v0  ;;  %v99_v30 = vld [vmem:[#allocation2] sm:$0xff]  ;;  %v196_v31 = vld [vmem:[#allocation7 + $0x10] sm:$0xff]  ;;  %v195_v32 = vld [vmem:[#allocation7 + $0x8] sm:$0xff] }
  0x47   :  { %582 = vmatpush3.msra.mxu0 %v111_v6  ;;  %617 = vmatpush3.msra.mxu1 %v205_v12  ;;  %v194_v33 = vld [vmem:[#allocation7] sm:$0xff]  ;;  %v303_v34 = vld [vmem:[#allocation8 + $0x78] sm:$0xff]  ;;  %v302_v35 = vld [vmem:[#allocation8 + $0x70] sm:$0xff] }
  0x48   :  { %583 = vmatprep.subr.mxu0 %v860_v0  ;;  %618 = vmatprep.subr.mxu1 %v860_v0  ;;  %v301_v36 = vld [vmem:[#allocation8 + $0x68] sm:$0xff]  ;;  %v300_v37 = vld [vmem:[#allocation8 + $0x60] sm:$0xff]  ;;  %v299_v38 = vld [vmem:[#allocation8 + $0x58] sm:$0xff] }
  0x49   :  { %584 = vmatpush3.msra.mxu0 %v110_v9  ;;  %619 = vmatpush3.msra.mxu1 %v204_v14  ;;  %v298_v39 = vld [vmem:[#allocation8 + $0x50] sm:$0xff]  ;;  %v297_v40 = vld [vmem:[#allocation8 + $0x48] sm:$0xff]  ;;  %v296_v41 = vld [vmem:[#allocation8 + $0x40] sm:$0xff] }
  0x4a   :  { %585 = vmatprep.subr.mxu0 %v860_v0  ;;  %620 = vmatprep.subr.mxu1 %v860_v0  ;;  %v295_v42 = vld [vmem:[#allocation8 + $0x38] sm:$0xff]  ;;  %v294_v43 = vld [vmem:[#allocation8 + $0x30] sm:$0xff]  ;;  %v293_v44 = vld [vmem:[#allocation8 + $0x28] sm:$0xff] }
  0x4b   :  { %586 = vmatpush3.msra.mxu0 %v109_v11  ;;  %621 = vmatpush3.msra.mxu1 %v203_v16  ;;  %v292_v45 = vld [vmem:[#allocation8 + $0x20] sm:$0xff]  ;;  %v291_v46 = vld [vmem:[#allocation8 + $0x18] sm:$0xff]  ;;  %v290_v52 = vld [vmem:[#allocation8 + $0x10] sm:$0xff] }
  0x4c   :  { %587 = vmatprep.subr.mxu0 %v860_v0  ;;  %622 = vmatprep.subr.mxu1 %v860_v0  ;;  %v501_v47 = vld [vmem:[%s1029_s2] ss:$0 sm:$0xff]  ;;  %v289_v53 = vld [vmem:[#allocation8 + $0x8] sm:$0xff]  ;;  %v288_v54 = vld [vmem:[#allocation8] sm:$0xff] }
  0x4d   :  { %588 = vmatpush3.msra.mxu0 %v108_v13  ;;  %623 = vmatpush3.msra.mxu1 %v202_v18  ;;  %v397_v55 = vld [vmem:[#allocation10 + $0x78] sm:$0xff]  ;;  %v396_v56 = vld [vmem:[#allocation10 + $0x70] sm:$0xff]  ;;  %v395_v57 = vld [vmem:[#allocation10 + $0x68] sm:$0xff]  ;;  %v475_v18 = vlaneseq }
  0x4e   :  { %589 = vmatprep.subr.mxu0 %v860_v0  ;;  %624 = vmatprep.subr.mxu1 %v860_v0  ;;  %v394_v58 = vld [vmem:[#allocation10 + $0x60] sm:$0xff]  ;;  %v393_v59 = vld [vmem:[#allocation10 + $0x58] sm:$0xff]  ;;  %v392_v60 = vld [vmem:[#allocation10 + $0x50] sm:$0xff] }
  0x4f   :  { %590 = vmatpush3.msra.mxu0 %v107_v15  ;;  %625 = vmatpush3.msra.mxu1 %v201_v20  ;;  %v391_v61 = vld [vmem:[#allocation10 + $0x48] sm:$0xff]  ;;  %v390_v62 = vld [vmem:[#allocation10 + $0x40] sm:$0xff]  ;;  %v389_v63 = vld [vmem:[#allocation10 + $0x38] sm:$0xff] }
  0x50   :  { %591 = vmatprep.subr.mxu0 %v860_v0  ;;  %626 = vmatprep.subr.mxu1 %v860_v0  ;;  %v388_v1 = vld [vmem:[#allocation10 + $0x30] sm:$0xff]  ;;  %v387_v2 = vld [vmem:[#allocation10 + $0x28] sm:$0xff]  ;;  %v386_v3 = vld [vmem:[#allocation10 + $0x20] sm:$0xff] }
  0x51   :  { %592 = vmatpush3.msra.mxu0 %v106_v17  ;;  %627 = vmatpush3.msra.mxu1 %v200_v22  ;;  %v385_v4 = vld [vmem:[#allocation10 + $0x18] sm:$0xff]  ;;  %v384_v10 = vld [vmem:[#allocation10 + $0x10] sm:$0xff]  ;;  %v383_v11 = vld [vmem:[#allocation10 + $0x8] sm:$0xff] }
  0x52   :  { %593 = vmatprep.subr.mxu0 %v860_v0  ;;  %628 = vmatprep.subr.mxu1 %v860_v0  ;;  %v502_v5 = vld [vmem:[%s1031_s4] ss:$0 sm:$0xff]  ;;  %v382_v12 = vld [vmem:[#allocation10] sm:$0xff] }
  0x53   :  { %594 = vmatpush3.msra.mxu0 %v105_v19  ;;  %629 = vmatpush3.msra.mxu1 %v199_v24  ;;  %v503_v13 = vld [vmem:[%s1033_s6] ss:$0 sm:$0xff]  ;;  %v476_v19 = vand.u32 127, %v475_v18  ;;  %s862_s6 = smov [#allocation11]  }
  0x54   :  { %595 = vmatprep.subr.mxu0 %v860_v0  ;;  %630 = vmatprep.subr.mxu1 %v860_v0  ;;  %v504_v20 = vld [vmem:[%s1035_s8] ss:$0 sm:$0xff]  ;;  %s490_s16 = sshll.u32 %s862_s6, 4  ;;  %s491_s16 = int_to_ptr.vmem [resolvable:$true] %s490_s16 }
  0x55   :  { %596 = vmatpush3.msra.mxu0 %v104_v21  ;;  %631 = vmatpush3.msra.mxu1 %v198_v26  ;;  %vm477_vm1 = vcmp.ge.s32.totalorder %v476_v19, 8  ;;  %s825_s17 = scalar_lea.vmem %s491_s16, 128  ;;  %p830_p12 = scmp.lt.s32.totalorder %s491_s16, %s491_s16 }
  0x56   :  { %597 = vmatprep.subr.mxu0 %v860_v0  ;;  %632 = vmatprep.subr.mxu1 %v860_v0  ;;  %p826_p11 = scmp.ne.s32.totalorder %s491_s16, %s825_s17  ;;  %p831_p13 = scmp.lt.s32.totalorder %s825_s17, %s825_s17 }
  0x57   :  { %598 = vmatpush3.msra.mxu0 %v103_v23  ;;  %633 = vmatpush3.msra.mxu1 %v197_v28 }
  0x58   :  { %599 = vmatprep.subr.mxu0 %v860_v0  ;;  %634 = vmatprep.subr.mxu1 %v860_v0  ;;  %p832_p0 = por %p831_p13, %p830_p12 }
  0x59   :  { %600 = vmatpush3.msra.mxu0 %v102_v25  ;;  %635 = vmatpush3.msra.mxu1 %v196_v31 }
  0x5a   :  { %601 = vmatprep.subr.mxu0 %v860_v0  ;;  %636 = vmatprep.subr.mxu1 %v860_v0  ;;  %p833_p1 = pnand %p832_p0, %p826_p11 }
  0x5b   :  { %602 = vmatpush3.msra.mxu0 %v101_v27  ;;  %637 = vmatpush3.msra.mxu1 %v195_v32 }
  0x5c   :  { %603 = vmatprep.subr.mxu0 %v860_v0  ;;  %638 = vmatprep.subr.mxu1 %v860_v0 }
  0x5d   :  { %604 = vmatpush3.msra.mxu0 %v100_v29  ;;  %639 = vmatpush3.msra.mxu1 %v194_v33 }
  0x5e   :  { %606 = vmatmul.mubr.f32.vlgmr.msra.gmra.mxu0 %v99_v30  ;;  %643 = vmatprep.subr.mxu0 %v860_v0 }
  0x5f   :  { %675 = vmatprep.mubr.msk.f32.mxu0 %vm861_vm0, %v860_v0  ;;  %678 = vmatprep.subr.mxu1 %v860_v0 }
  0x60   :  { %644 = vmatpush3.msra.mxu0 %v303_v34 }
  0x61   :  { %645 = vmatprep.subr.mxu0 %v860_v0 }
  0x62   :  { %646 = vmatpush3.msra.mxu0 %v302_v35 }
  0x63   :  { %647 = vmatprep.subr.mxu0 %v860_v0 }
  0x64   :  { %648 = vmatpush3.msra.mxu0 %v301_v36 }
  0x65   :  { %649 = vmatprep.subr.mxu0 %v860_v0 }
  0x66   :  { %650 = vmatpush3.msra.mxu0 %v300_v37 }
  0x67   :  { %651 = vmatprep.subr.mxu0 %v860_v0 }
  0x68   :  { %652 = vmatpush3.msra.mxu0 %v299_v38 }
  0x69   :  { %653 = vmatprep.subr.mxu0 %v860_v0 }
  0x6a   :  { %654 = vmatpush3.msra.mxu0 %v298_v39 }
  0x6b   :  { %655 = vmatprep.subr.mxu0 %v860_v0 }
  0x6c   :  { %656 = vmatpush3.msra.mxu0 %v297_v40 }
  0x6d   :  { %657 = vmatprep.subr.mxu0 %v860_v0 }
  0x6e   :  { %658 = vmatpush3.msra.mxu0 %v296_v41 }
  0x6f   :  { %659 = vmatprep.subr.mxu0 %v860_v0 }
  0x70   :  { %660 = vmatpush3.msra.mxu0 %v295_v42 }
  0x71   :  { %661 = vmatprep.subr.mxu0 %v860_v0 }
  0x72   :  { %662 = vmatpush3.msra.mxu0 %v294_v43 }
  0x73   :  { %663 = vmatprep.subr.mxu0 %v860_v0 }
  0x74   :  { %664 = vmatpush3.msra.mxu0 %v293_v44 }
  0x75   :  { %665 = vmatprep.subr.mxu0 %v860_v0 }
  0x76   :  { %666 = vmatpush3.msra.mxu0 %v292_v45 }
  0x77   :  { %667 = vmatprep.subr.mxu0 %v860_v0 }
  0x78   :  { %668 = vmatpush3.msra.mxu0 %v291_v46 }
  0x79   :  { %669 = vmatprep.subr.mxu0 %v860_v0 }
  0x7a   :  { %670 = vmatpush3.msra.mxu0 %v290_v52 }
  0x7b   :  { %671 = vmatprep.subr.mxu0 %v860_v0 }
  0x7c   :  { %672 = vmatpush3.msra.mxu0 %v289_v53 }
  0x7d   :  { %673 = vmatprep.subr.mxu0 %v860_v0 }
  0x7e   :  { %674 = vmatpush3.msra.mxu0 %v288_v54 }
 0x11e   :  { %v189_v48 = vpop.f32.mrf.mxu0 }
 0x11f   :  { %v190_v49 = vadd.f32 %v501_v47, %v189_v48 }
 0x120   :  { %v607_v50 = vpop.f32.mrf.mxu0 }
 0x121   :  { %v193_v51 = vmax.f32 %v190_v49, 0.0 }
 0x123   :  { %641 = vmatmul.mubr.f32.vlgmr.msra.gmra.mxu1 %v193_v51 }
 0x124   :  { %710 = vmatprep.mubr.msk.f32.mxu1 %vm861_vm0, %v860_v0  ;;  %679 = vmatpush3.msra.mxu1 %v397_v55 }
 0x125   :  { %680 = vmatprep.subr.mxu1 %v860_v0 }
 0x126   :  { %681 = vmatpush3.msra.mxu1 %v396_v56 }
 0x127   :  { %682 = vmatprep.subr.mxu1 %v860_v0 }
 0x128   :  { %683 = vmatpush3.msra.mxu1 %v395_v57 }
 0x129   :  { %684 = vmatprep.subr.mxu1 %v860_v0 }
 0x12a   :  { %685 = vmatpush3.msra.mxu1 %v394_v58 }
 0x12b   :  { %686 = vmatprep.subr.mxu1 %v860_v0 }
 0x12c   :  { %687 = vmatpush3.msra.mxu1 %v393_v59 }
 0x12d   :  { %688 = vmatprep.subr.mxu1 %v860_v0 }
 0x12e   :  { %689 = vmatpush3.msra.mxu1 %v392_v60 }
 0x12f   :  { %690 = vmatprep.subr.mxu1 %v860_v0 }
 0x130   :  { %691 = vmatpush3.msra.mxu1 %v391_v61 }
 0x131   :  { %692 = vmatprep.subr.mxu1 %v860_v0 }
 0x132   :  { %693 = vmatpush3.msra.mxu1 %v390_v62 }
 0x133   :  { %694 = vmatprep.subr.mxu1 %v860_v0 }
 0x134   :  { %695 = vmatpush3.msra.mxu1 %v389_v63 }
 0x135   :  { %696 = vmatprep.subr.mxu1 %v860_v0 }
 0x136   :  { %697 = vmatpush3.msra.mxu1 %v388_v1 }
 0x137   :  { %698 = vmatprep.subr.mxu1 %v860_v0 }
 0x138   :  { %699 = vmatpush3.msra.mxu1 %v387_v2 }
 0x139   :  { %700 = vmatprep.subr.mxu1 %v860_v0 }
 0x13a   :  { %701 = vmatpush3.msra.mxu1 %v386_v3 }
 0x13b   :  { %702 = vmatprep.subr.mxu1 %v860_v0 }
 0x13c   :  { %703 = vmatpush3.msra.mxu1 %v385_v4 }
 0x13d   :  { %704 = vmatprep.subr.mxu1 %v860_v0 }
 0x13e   :  { %705 = vmatpush3.msra.mxu1 %v384_v10 }
 0x13f   :  { %706 = vmatprep.subr.mxu1 %v860_v0 }
 0x140   :  { %707 = vmatpush3.msra.mxu1 %v383_v11 }
 0x141   :  { %708 = vmatprep.subr.mxu1 %v860_v0 }
 0x142   :  { %709 = vmatpush3.msra.mxu1 %v382_v12 }
 0x1e3   :  { %v283_v6 = vpop.f32.mrf.mxu1 }
 0x1e4   :  { %v284_v7 = vadd.f32 %v502_v5, %v283_v6 }
 0x1e5   :  { %v642_v8 = vpop.f32.mrf.mxu1 }
 0x1e6   :  { %v287_v9 = vmax.f32 %v284_v7, 0.0 }
 0x1e8   :  { %676 = vmatmul.mubr.f32.vlgmr.msra.gmra.mxu0 %v287_v9 }
 0x2a8   :  { %v377_v14 = vpop.f32.mrf.mxu0 }
 0x2a9   :  { %v378_v15 = vadd.f32 %v503_v13, %v377_v14 }
 0x2aa   :  { %v677_v16 = vpop.f32.mrf.mxu0 }
 0x2ab   :  { %v381_v17 = vmax.f32 %v378_v15, 0.0 }
 0x2ad   :  { %711 = vmatmul.mubr.f32.vlgmr.msra.gmra.mxu1 %v381_v17 }
 0x36d   :  { %v471_v21 = vpop.f32.mrf.mxu1 }
 0x36e   :  { %v472_v0 = vadd.f32 %v504_v20, %v471_v21 }
 0x36f   :  { %v712_v22 = vpop.f32.mrf.mxu1 }
 0x370   :  { %v478_v23 = vsel %vm477_vm1, %v472_v0, 0.0 }
 0x371   :  { %v479_v24 = vadd.f32 1e-06, %v478_v23 }
 0x373   :  { %v480_v25 = vmul.f32 1.442695, %v479_v24 }
 0x375   :  { %723 = vpow2.f32 %v480_v25 }
 0x382   :  { %v724_v26 = vpop.eup %723 }
 0x383   :  { %v482_v27 = vsel %vm477_vm1, %v724_v26, %v472_v0 }
 0x384   :  { %483 = vst [vmem:[#allocation11] sm:$0xff] %v482_v27 }
 0x385   :  { %836 = shalt.err (!%p833_p1)
}
 0x386   :  { %493 = dma.vmem_to_hbm [thread:$0]  %s491_s16, 128, %s1036_s9, [#allocation4]  }
 0x387   :  { %851 = dma.done.wait [#allocation4], 128  }
 0x388   :  { %852 = vsyncadd [#allocation4], 4294967168 }
 0x389   :  { %497 = vsyncpa [#allocation3], 1 }
 0x38a   :  { %498 = vsyncpa [#allocation6], 1 }
 0x38b   :  { %499 = vsyncpa [#allocation9], 1 }
 0x38c   :  { %500 = vsyncpa [#allocation4], 1 }

</bundles_post_ra>
